<compile_context>
chip_gen: v6e
topology: v6e:2x2x1
jax: 0.10.0
libtpu: 0.0.40
codegen_flags: <defaults>
</compile_context>

<pallas_src>
import functools

import jax
import jax.numpy as jnp
from jax.experimental import pallas as pl
from jax.experimental.pallas import tpu as pltpu


def _round_up(v, m):
    return (v + m - 1) // m * m


def _cdiv(a, b):
    return -(-a // b)


def _pick_vmem_limit():
    # 64 MiB scoped limit on 128-MiB-VMEM chips (v5e/v6e), 32 MiB elsewhere (v7x).
    try:
        cap = pltpu.get_tpu_info().vmem_capacity_bytes
        if cap >= 128 * 1024 * 1024:
            return 64 * 1024 * 1024
    except Exception:
        pass
    return 32 * 1024 * 1024


_VMEM_LIMIT = _pick_vmem_limit()


# ----------------------------------------------------------------------------
# Linear layer kernels: bf16 inputs/weights, f32 accumulation, fused
# (optional) input-side leaky_relu + bias + output activation.
# ----------------------------------------------------------------------------
def _activate(v, activation, slope):
    if activation == "relu":
        return jnp.maximum(v, 0.0)
    if activation == "sigmoid":
        return jax.nn.sigmoid(v)
    if activation == "leaky_relu":
        return jnp.where(v > 0, v, slope * v)
    return v


def _in_act(a, in_activation, in_slope):
    if in_activation == "leaky_relu":
        return jnp.where(a > 0, a, in_slope * a)
    if in_activation == "relu":
        return jnp.maximum(a, 0)
    return a


def _mm_kernel(a_ref, b_ref, bias_ref, o_ref, *, activation, slope,
               in_activation, in_slope):
    a = _in_act(a_ref[...], in_activation, in_slope)
    acc = jnp.dot(a, b_ref[...], preferred_element_type=jnp.float32)
    acc = acc + bias_ref[...]
    o_ref[...] = _activate(acc, activation, slope).astype(o_ref.dtype)


def _mm_acc_kernel(a_ref, b_ref, bias_ref, o_ref, acc_ref, *, activation, slope,
                   in_activation, in_slope):
    @pl.when(pl.program_id(2) == 0)
    def _():
        acc_ref[...] = jnp.zeros_like(acc_ref)

    a = _in_act(a_ref[...], in_activation, in_slope)
    acc_ref[...] += jnp.dot(a, b_ref[...], preferred_element_type=jnp.float32)

    @pl.when(pl.program_id(2) == pl.num_programs(2) - 1)
    def _():
        acc = acc_ref[...] + bias_ref[...]
        o_ref[...] = _activate(acc, activation, slope).astype(o_ref.dtype)


def pack_linear(w, b=None):
    """Pad a weight (and bias) once, in bf16, to MXU-friendly shapes."""
    k, n = w.shape
    kp = _round_up(k, 128)
    np_ = _round_up(n, 128)
    wp = jnp.zeros((kp, np_), jnp.bfloat16).at[:k, :n].set(w.astype(jnp.bfloat16))
    bp = jnp.zeros((1, np_), jnp.float32)
    if b is not None:
        bp = bp.at[0, :n].set(b.astype(jnp.float32))
    return {"w": wp, "b": bp, "in_dim": k, "out_dim": n}


def _pad_rows(m):
    return _round_up(m, 8) if m < 128 else _round_up(m, 128)


def pack_activation(x, kp=None):
    """Pad/cast an activation once; K columns are zero-padded (safe vs zero-padded
    weight rows), rows are zero-padded and sliced/ignored downstream."""
    m, k = x.shape
    kp = _round_up(k, 128) if kp is None else kp
    mp = _pad_rows(m)
    data = jnp.zeros((mp, kp), jnp.bfloat16).at[:m, :k].set(x.astype(jnp.bfloat16))
    return {"data": data, "m": m, "n": k}


def _choose_tm(mp):
    tm = next((t for t in (512, 256, 128) if mp % t == 0), mp)
    # v7x has two TensorCores fed via parallel grid axes: prefer >= 2 M tiles.
    if mp // tm < 2 and mp >= 256 and (mp // 2) % 8 == 0:
        tm = mp // 2
    return tm


def pallas_linear(x, lin, activation="none", slope=0.01,
                  in_activation="none", in_slope=0.01, out="f32"):
    """y = activation(in_activation(x) @ w + b), bf16 MXU matmul, f32 accumulation.

    `x`: plain (m, k) array or a packed activation dict (padded bf16).
    `out`: "f32" / "bf16" (sliced to (m, n)), or "packed" (padded bf16 kept
    resident for the next pallas_linear / the edge kernel; no slice/re-pad).
    """
    wp, bp = lin["w"], lin["b"]
    kp, np_ = wp.shape
    n = lin["out_dim"]

    if isinstance(x, dict):
        xp, m = x["data"], x["m"]
        assert xp.shape[1] == kp, "packed activation width mismatch"
    else:
        assert x.shape[1] == lin["in_dim"]
        packed = pack_activation(x, kp)
        xp, m = packed["data"], packed["m"]
    mp = xp.shape[0]

    tm = _choose_tm(mp)
    tn = 256 if np_ % 256 == 0 else 128
    tk = kp if kp <= 2048 else next(c for c in (2048, 1024, 512, 256, 128)
                                    if kp % c == 0)
    out_dtype = jnp.float32 if out == "f32" else jnp.bfloat16
    kern_kwargs = dict(activation=activation, slope=slope,
                       in_activation=in_activation, in_slope=in_slope)

    if tk == kp:
        res = pl.pallas_call(
            functools.partial(_mm_kernel, **kern_kwargs),
            out_shape=jax.ShapeDtypeStruct((mp, np_), out_dtype),
            grid_spec=pltpu.PrefetchScalarGridSpec(
                num_scalar_prefetch=0,
                grid=(mp // tm, np_ // tn),
                in_specs=[
                    pl.BlockSpec((tm, kp), lambda i, j: (i, 0)),
                    pl.BlockSpec((kp, tn), lambda i, j: (0, j)),
                    pl.BlockSpec((1, tn), lambda i, j: (0, j)),
                ],
                out_specs=pl.BlockSpec((tm, tn), lambda i, j: (i, j)),
            ),
            compiler_params=pltpu.CompilerParams(
                dimension_semantics=("parallel", "parallel"),
                vmem_limit_bytes=_VMEM_LIMIT),
        )(xp, wp, bp)
    else:
        res = pl.pallas_call(
            functools.partial(_mm_acc_kernel, **kern_kwargs),
            out_shape=jax.ShapeDtypeStruct((mp, np_), out_dtype),
            grid_spec=pltpu.PrefetchScalarGridSpec(
                num_scalar_prefetch=0,
                grid=(mp // tm, np_ // tn, kp // tk),
                in_specs=[
                    pl.BlockSpec((tm, tk), lambda i, j, kk: (i, kk)),
                    pl.BlockSpec((tk, tn), lambda i, j, kk: (kk, j)),
                    pl.BlockSpec((1, tn), lambda i, j, kk: (0, j)),
                ],
                out_specs=pl.BlockSpec((tm, tn), lambda i, j, kk: (i, j)),
                scratch_shapes=[pltpu.VMEM((tm, tn), jnp.float32)],
            ),
            compiler_params=pltpu.CompilerParams(
                dimension_semantics=("parallel", "parallel", "arbitrary"),
                vmem_limit_bytes=_VMEM_LIMIT),
        )(xp, wp, bp)

    if out == "packed":
        return {"data": res, "m": m, "n": n}
    return res[:m, :n]


# ----------------------------------------------------------------------------
# GATv2 per-edge attention logits, tiled over the edge axis:
#   alpha[e, h] = sum_c leaky_relu(x_i + x_j + e_attr, 0.2)[e, h*C + c] * att[h, c]
# Inputs arrive as bf16 (gathers from packed linear outputs); the per-head
# reduction is a bf16 MXU matmul against a pre-built block-diagonal matrix.
# ----------------------------------------------------------------------------
def _edge_attn_kernel(xl_ref, xr_ref, ep_ref, attm_ref, alpha_ref, *, slope):
    v = (xl_ref[...].astype(jnp.float32) + xr_ref[...].astype(jnp.float32)
         + ep_ref[...].astype(jnp.float32))
    v = jnp.where(v > 0, v, slope * v)
    alpha_ref[...] = jnp.dot(v.astype(jnp.bfloat16), attm_ref[...],
                             preferred_element_type=jnp.float32
                             ).astype(alpha_ref.dtype)


def make_attm(att):
    """Block-diagonal [heads*C, 128] bf16 matrix (built once at init)."""
    heads, c = att.shape
    f = heads * c
    rows = jnp.arange(f)
    cols = jnp.repeat(jnp.arange(heads), c)
    attm = jnp.zeros((f, 128), jnp.bfloat16)
    return attm.at[rows, cols].set(att.reshape(-1).astype(jnp.bfloat16))


def _edge_tiles(e):
    if e <= 256:
        return _round_up(e, 16), 1
    # >= 2 tiles (keeps v7x's second TensorCore busy), up to 2048 edge rows/tile.
    nt = max(2, _cdiv(e, 2048))
    return _round_up(_cdiv(e, nt), 16), nt


def edge_attention_scores(xl, xr, e_p, attm, te, nt, slope=0.2):
    ep_rows, f = xl.shape
    return pl.pallas_call(
        functools.partial(_edge_attn_kernel, slope=slope),
        out_shape=jax.ShapeDtypeStruct((ep_rows, 128), jnp.bfloat16),
        grid_spec=pltpu.PrefetchScalarGridSpec(
            num_scalar_prefetch=0,
            grid=(nt,),
            in_specs=[
                pl.BlockSpec((te, f), lambda i: (i, 0)),
                pl.BlockSpec((te, f), lambda i: (i, 0)),
                pl.BlockSpec((te, f), lambda i: (i, 0)),
                pl.BlockSpec((f, 128), lambda i: (0, 0)),
            ],
            out_specs=pl.BlockSpec((te, 128), lambda i: (i, 0)),
        ),
        compiler_params=pltpu.CompilerParams(
            dimension_semantics=("parallel",),
            vmem_limit_bytes=_VMEM_LIMIT),
    )(xl, xr, e_p, attm)


# ----------------------------------------------------------------------------
# GATv2Conv (add_self_loops=True, fill_value='mean', negative_slope=0.2,
# share_weights=False; attention dropout = identity at inference).
# ----------------------------------------------------------------------------
def gatv2_conv(x, edge_index, edge_attr, p, heads, out_channels, concat,
               in_activation="none"):
    n = x.shape[0]
    src, dst = edge_index[0], edge_index[1]
    hcl = heads * out_channels

    # add_self_loops with fill_value='mean' (per-target mean of edge attrs)
    cnt = jax.ops.segment_sum(jnp.ones_like(src, dtype=jnp.float32), dst,
                              num_segments=n)
    loop_attr = (jax.ops.segment_sum(edge_attr, dst, num_segments=n)
                 / jnp.maximum(cnt, 1.0)[:, None])
    loop = jnp.arange(n, dtype=src.dtype)
    src2 = jnp.concatenate([src, loop])
    dst2 = jnp.concatenate([dst, loop])
    ea2 = jnp.concatenate([edge_attr, loop_attr], axis=0)
    e2 = src2.shape[0]

    # Fused source/target transforms (one matmul -> [x_l | x_r]); inter-layer
    # leaky_relu is fused into this matmul (in_activation); output stays packed
    # bf16 so the edge gathers pull half the bytes and need no pad/cast copy.
    x_lr = pallas_linear(x, p["lin_lr"], in_activation=in_activation, out="packed")
    xd = x_lr["data"]                                   # (mp >= n, >=2*hcl) bf16
    e_p = pallas_linear(ea2, p["lin_e"], out="bf16")    # (e2, hcl) bf16, no bias

    te, nt = _edge_tiles(e2)
    ep_rows = te * nt
    pad = ep_rows - e2
    src2p = jnp.pad(src2, (0, pad))                     # padded gather indices ->
    dst2p = jnp.pad(dst2, (0, pad))                     # gathers land pre-padded
    xl_src = xd[:, :hcl][src2p]                         # (ep_rows, hcl) bf16
    xr_dst = xd[:, hcl:2 * hcl][dst2p]
    e_pp = jnp.pad(e_p, ((0, pad), (0, 0)))

    alpha = edge_attention_scores(xl_src, xr_dst, e_pp, p["attm"], te, nt, slope=0.2)
    alpha = alpha[:e2, :heads].astype(jnp.float32)

    # segment softmax over destination nodes (data-dependent grouping, f32)
    amax = jax.ops.segment_max(alpha, dst2, num_segments=n)
    alpha = jnp.exp(alpha - amax[dst2])
    denom = jax.ops.segment_sum(alpha, dst2, num_segments=n)
    alpha = alpha / denom[dst2]

    # message = x_j * alpha ; exact f32 scatter-add
    msg = (xl_src[:e2].astype(jnp.float32).reshape(e2, heads, out_channels)
           * alpha[:, :, None]).reshape(e2, hcl)
    out = jax.ops.segment_sum(msg, dst2, num_segments=n)

    if concat:
        return out + p["bias"]
    return out.reshape(n, heads, out_channels).mean(axis=1) + p["bias"]


# ----------------------------------------------------------------------------
# Full GATmann forward (pooling='gated'), inference-mode dropout.
# ----------------------------------------------------------------------------
def gatmann_forward(params, exp, x, edge_index, edge_attr, batch, n_graphs):
    heads = params["heads"]
    embed = params["embed_dim"]
    hc = heads * embed

    # gene MLP: Linear -> Dropout(id) -> ReLU -> Linear ; broadcast per node.
    g = pallas_linear(exp, params["gene1"], activation="relu", out="packed")
    g = pallas_linear(g, params["gene2"], out="f32")           # [G, hc]
    g_nodes = g[batch]                                          # robust gather

    # GAT stack (F.leaky_relu between layers fused into the next lin_lr matmul)
    h = gatv2_conv(x, edge_index, edge_attr, params["gat0"],
                   heads=heads, out_channels=embed, concat=True)
    for p in params["gat_layers"]:
        h = gatv2_conv(h, edge_index, edge_attr, p,
                       heads=heads, out_channels=hc, concat=False,
                       in_activation="leaky_relu")

    z = h + g_nodes
    zp = pack_activation(z)                 # pad/cast once, reused by gate & nn

    # GlobalAttention ('gated') pooling
    gate = pallas_linear(zp, params["gate1"], activation="relu", out="packed")
    gate = pallas_linear(gate, params["gate2"], out="f32")      # [N, 1]
    feat = pallas_linear(zp, params["nn1"], activation="relu", out="packed")
    feat = pallas_linear(feat, params["nn2"], out="f32")        # [N, out]
    gmax = jax.ops.segment_max(gate, batch, num_segments=n_graphs)
    gate = jnp.exp(gate - gmax[batch])
    gden = jax.ops.segment_sum(gate, batch, num_segments=n_graphs)
    gate = gate / gden[batch]
    pooled = jax.ops.segment_sum(gate * feat, batch, num_segments=n_graphs)

    # fc: ReLU -> Dropout(id) -> Linear -> Sigmoid -> Linear
    y = jnp.maximum(pooled, 0.0)
    y = pallas_linear(y, params["fc1"], activation="sigmoid", out="packed")
    y = pallas_linear(y, params["fc2"], out="f32")
    return y                                                    # [G, 1]


# ----------------------------------------------------------------------------
# Deterministic parameter initialization (glorot-uniform, zero biases),
# with weights pre-padded / pre-packed once.
# ----------------------------------------------------------------------------
def init_params(key, cfg):
    keys = iter(jax.random.split(key, 128))

    def glorot(shape):
        lim = (6.0 / (shape[0] + shape[1])) ** 0.5
        return jax.random.uniform(next(keys), shape, jnp.float32, -lim, lim)

    heads = cfg["n_heads"]
    embed = cfg["embed_dim"]
    hc = embed * heads

    def linear(in_dim, out_dim, bias=True):
        w = glorot((in_dim, out_dim))
        b = jnp.zeros((out_dim,), jnp.float32) if bias else None
        return pack_linear(w, b)

    def gat(in_dim, out_ch, concat):
        hcl = heads * out_ch
        w_lr = jnp.concatenate([glorot((in_dim, hcl)), glorot((in_dim, hcl))], axis=1)
        b_lr = jnp.zeros((2 * hcl,), jnp.float32)
        att = glorot((heads, out_ch))
        return {
            "lin_lr": pack_linear(w_lr, b_lr),
            "lin_e": pack_linear(glorot((cfg["edge_features"], hcl)), None),
            "attm": make_attm(att),
            "bias": jnp.zeros((hcl if concat else out_ch,), jnp.float32),
        }

    return {
        "heads": heads,
        "embed_dim": embed,
        "gene1": linear(cfg["n_genes"], cfg["gene_hidden"]),
        "gene2": linear(cfg["gene_hidden"], hc),
        "gat0": gat(cfg["node_features"], embed, True),
        "gat_layers": [gat(hc, hc, False) for _ in range(cfg["n_conv_layers"] - 1)],
        "gate1": linear(hc, cfg["hidden_dim"]),
        "gate2": linear(cfg["hidden_dim"], 1),
        "nn1": linear(hc, cfg["hidden_dim"]),
        "nn2": linear(cfg["hidden_dim"], cfg["output_dim"]),
        "fc1": linear(cfg["output_dim"], cfg["fc_hidden"]),
        "fc2": linear(cfg["fc_hidden"], 1),
    }


if __name__ == "__main__":
    # Small, forward-consistent hyper-parameters (same structure as defaults).
    cfg = dict(node_features=79, edge_features=10, fc_hidden=128, gene_hidden=256,
               n_conv_layers=3, n_heads=2, embed_dim=32, hidden_dim=128,
               output_dim=64, n_genes=128)

    key = jax.random.PRNGKey(0)
    kp_, kx, ke, kexp = jax.random.split(key, 4)
    params = init_params(kp_, cfg)

    n_graphs = 2
    nodes_per_graph = 8
    n_nodes = n_graphs * nodes_per_graph
    batch = jnp.repeat(jnp.arange(n_graphs, dtype=jnp.int32), nodes_per_graph)

    # bidirectional ring edges within each graph
    srcs, dsts = [], []
    for g in range(n_graphs):
        off = g * nodes_per_graph
        s = jnp.arange(nodes_per_graph, dtype=jnp.int32)
        d = (s + 1) % nodes_per_graph
        srcs += [s + off, d + off]
        dsts += [d + off, s + off]
    edge_index = jnp.stack([jnp.concatenate(srcs), jnp.concatenate(dsts)])
    n_edges = edge_index.shape[1]

    exp = jax.random.normal(kexp, (n_graphs, cfg["n_genes"]), jnp.float32)
    x = jax.random.normal(kx, (n_nodes, cfg["node_features"]), jnp.float32)
    edge_attr = jax.random.normal(ke, (n_edges, cfg["edge_features"]), jnp.float32)

    out = gatmann_forward(params, exp, x, edge_index, edge_attr, batch, n_graphs)
    out = jax.block_until_ready(out)
    assert out.shape == (n_graphs, 1)
    print("KERNEL_OK")
</pallas_src>

<mosaic_0001>
module attributes {stable_mosaic.version = 11 : i64} {
  func.func @_mm_kernel(%arg0: i32, %arg1: i32, %arg2: memref<8x128xbf16, #tpu.memory_space<vmem>>, %arg3: memref<128x256xbf16, #tpu.memory_space<vmem>>, %arg4: memref<1x256xf32, #tpu.memory_space<vmem>>, %arg5: memref<8x256xbf16, #tpu.memory_space<vmem>>) attributes {dimension_semantics = [#tpu.dimension_semantics<parallel>, #tpu.dimension_semantics<parallel>], iteration_bounds = array<i64: 1, 1>, scalar_prefetch = 0 : i64, scratch_operands = 0 : i64, tpu.core_type = #tpu.core_type<tc>, window_params = [{transform_indices = @transform_0, window_bounds = array<i64: 8, 128>}, {transform_indices = @transform_1, window_bounds = array<i64: 128, 256>}, {transform_indices = @transform_2, window_bounds = array<i64: 1, 256>}, {transform_indices = @transform_3, window_bounds = array<i64: 8, 256>}]} {
    %c0 = arith.constant 0 : index
    %c0_0 = arith.constant 0 : index
    %0 = vector.load %arg2[%c0, %c0_0] : memref<8x128xbf16, #tpu.memory_space<vmem>>, vector<8x128xbf16>
    %c0_1 = arith.constant 0 : index
    %c0_2 = arith.constant 0 : index
    %1 = vector.load %arg3[%c0_1, %c0_2] : memref<128x256xbf16, #tpu.memory_space<vmem>>, vector<128x256xbf16>
    %cst = arith.constant dense<0.000000e+00> : vector<8x256xf32>
    %2 = tpu.matmul %0, %1, %cst {dimension_numbers = #tpu.dot_dimension_numbers<[1], [0], [0], [1], [0, 0, 1, 1], [], []>} : vector<8x128xbf16>, vector<128x256xbf16>, vector<8x256xf32> -> vector<8x256xf32>
    %c0_3 = arith.constant 0 : index
    %c0_4 = arith.constant 0 : index
    %3 = vector.load %arg4[%c0_3, %c0_4] : memref<1x256xf32, #tpu.memory_space<vmem>>, vector<1x256xf32>
    %4 = vector.broadcast %3 : vector<1x256xf32> to vector<8x256xf32>
    %5 = arith.addf %2, %4 : vector<8x256xf32>
    %cst_5 = arith.constant 0.000000e+00 : f32
    %6 = vector.broadcast %cst_5 : f32 to vector<8x256xf32>
    %7 = arith.maximumf %5, %6 : vector<8x256xf32>
    %8 = arith.truncf %7 : vector<8x256xf32> to vector<8x256xbf16>
    %c0_6 = arith.constant 0 : index
    %c0_7 = arith.constant 0 : index
    %9 = vector.load %arg5[%c0_6, %c0_7] : memref<8x256xbf16, #tpu.memory_space<vmem>>, vector<8x256xbf16>
    tpu.vector_store %arg5[%c0_6, %c0_7], %8 {strides = array<i32>} : memref<8x256xbf16, #tpu.memory_space<vmem>>, vector<8x256xbf16>,
    return
  }
  func.func @transform_0(%arg0: i32, %arg1: i32) -> (i32, i32) {
    %c0_i32 = arith.constant 0 : i32
    %c0_i32_0 = arith.constant 0 : i32
    return %arg0, %c0_i32 : i32, i32
  }
  func.func @transform_1(%arg0: i32, %arg1: i32) -> (i32, i32) {
    %c0_i32 = arith.constant 0 : i32
    %c0_i32_0 = arith.constant 0 : i32
    return %c0_i32, %arg1 : i32, i32
  }
  func.func @transform_2(%arg0: i32, %arg1: i32) -> (i32, i32) {
    %c0_i32 = arith.constant 0 : i32
    %c0_i32_0 = arith.constant 0 : i32
    return %c0_i32, %arg1 : i32, i32
  }
  func.func @transform_3(%arg0: i32, %arg1: i32) -> (i32, i32) {
    %c0_i32 = arith.constant 0 : i32
    return %arg0, %arg1 : i32, i32
  }
}

</mosaic_0001>

<bundles_post_ra>
// kernel: tpu_custom_call.1
= control target key start
LH: loop header
LB: loop body
LE: loop exit
PB: predicated region body
PF: predicated region fallthrough
CT: control target
= control target key end

     0   :  { %8 = vsyncpa [#allocation3], 0  ;;  %s371_s0 = inlined_call_operand.hbm [shape: bf16[8,128], index: 0, kind: input, shape index: {}]   ;;  %s372_s1 = inlined_call_operand.hbm [shape: bf16[128,256], index: 1, kind: input, shape index: {}]   ;;  %s373_s2 = inlined_call_operand.vmem [shape: f32[1,256], index: 2, kind: input, shape index: {}]   ;;  %s374_s3 = inlined_call_operand.hbm [shape: bf16[8,256], index: 3, kind: output, shape index: {}]  }
   0x1   :  { %9 = vsyncpa [#allocation6], 0 }
   0x2   :  { %10 = vsyncpa [#allocation4], 0  ;;  %s333_s12 = smov [#allocation2]   ;;  %s334_s14 = smov [#allocation5]  }
   0x3   :  { %s17_s13 = sshll.u32 %s333_s12, 4  ;;  %s26_s15 = sshll.u32 %s334_s14, 4  ;;  %s18_s13 = int_to_ptr.vmem [resolvable:$true] %s17_s13  ;;  %s27_s15 = int_to_ptr.vmem [resolvable:$true] %s26_s15 }
   0x4   :  { %s275_s16 = scalar_lea.vmem %s18_s13, 64  ;;  %p280_p1 = scmp.lt.s32.totalorder %s18_s13, %s18_s13 }
   0x5   :  { %p276_p0 = scmp.ne.s32.totalorder %s18_s13, %s275_s16  ;;  %p281_p2 = scmp.lt.s32.totalorder %s275_s16, %s275_s16 }
   0x7   :  { %p282_p3 = por %p281_p2, %p280_p1 }
   0x9   :  { %p283_p4 = pnand %p282_p3, %p276_p0 }
   0xb   :  { %286 = shalt.err (!%p283_p4)
}
   0xc   :  { %20 = dma.hbm_to_vmem [thread:$0]  %s371_s0, 64, %s18_s13, [#allocation3]  }
   0xd   :  { %s295_s19 = scalar_lea.vmem %s27_s15, 2048  ;;  %p300_p6 = scmp.lt.s32.totalorder %s27_s15, %s27_s15 }
   0xe   :  { %p296_p5 = scmp.ne.s32.totalorder %s27_s15, %s295_s19  ;;  %p301_p7 = scmp.lt.s32.totalorder %s295_s19, %s295_s19 }
  0x10   :  { %p302_p8 = por %p301_p7, %p300_p6 }
  0x12   :  { %p303_p9 = pnand %p302_p8, %p296_p5 }
  0x14   :  { %306 = shalt.err (!%p303_p9)
}
  0x15   :  { %s335_s20 = smov 128   ;;  %s336_s21 = smov 8  }
  0x16   :  { %32 = dma.hbm_to_vmem [thread:$0]  %s372_s1, 2048, %s27_s15, [#allocation6], %s335_s20, %s335_s20, %s336_s21  }
  0x17   :  { %327 = dma.done.wait [#allocation3], 64  }
  0x18   :  { %328 = vsyncadd [#allocation3], 4294967232 }
  0x19   :  { %329 = dma.done.wait [#allocation6], 2048  }
  0x1a   :  { %330 = vsyncadd [#allocation6], 4294965248  ;;  %v337_v0 = vmov 0   ;;  %v243_v1 = vld [vmem:[#allocation5 + $0x74] ss:$8 sps:$4 sm:$0xff]   ;;  %v61_v18 = vlaneseq  ;;  %s338_s24 = smov [#allocation7]  }
  0x1b   :  { %183 = vmatprep.mubr.bf16.mxu0 %v337_v0  ;;  %v245_v2 = vld [vmem:[#allocation5 + $0x70] ss:$8 sps:$4 sm:$0xff]   ;;  %151 = vmatprep.subr.bf16.mxu0 %v243_v1  ;;  %v246_v3 = vld [vmem:[#allocation5 + $0x64] ss:$8 sps:$4 sm:$0xff]   ;;  %v248_v4 = vld [vmem:[#allocation5 + $0x60] ss:$8 sps:$4 sm:$0xff]  }
  0x1c   :  { %152 = vmatpush1.bf16.msra.mxu0 %v245_v2  ;;  %v249_v5 = vld [vmem:[#allocation5 + $0x54] ss:$8 sps:$4 sm:$0xff]   ;;  %v251_v6 = vld [vmem:[#allocation5 + $0x50] ss:$8 sps:$4 sm:$0xff]   ;;  %v252_v7 = vld [vmem:[#allocation5 + $0x44] ss:$8 sps:$4 sm:$0xff]  }
  0x1d   :  { %153 = vmatprep.subr.bf16.mxu0 %v246_v3  ;;  %v254_v8 = vld [vmem:[#allocation5 + $0x40] ss:$8 sps:$4 sm:$0xff]   ;;  %v255_v9 = vld [vmem:[#allocation5 + $0x34] ss:$8 sps:$4 sm:$0xff]   ;;  %v257_v10 = vld [vmem:[#allocation5 + $0x30] ss:$8 sps:$4 sm:$0xff]  }
  0x1e   :  { %v258_v11 = vld [vmem:[#allocation5 + $0x24] ss:$8 sps:$4 sm:$0xff]   ;;  %v260_v12 = vld [vmem:[#allocation5 + $0x20] ss:$8 sps:$4 sm:$0xff]   ;;  %v261_v13 = vld [vmem:[#allocation5 + $0x14] ss:$8 sps:$4 sm:$0xff]  }
  0x1f   :  { %v263_v14 = vld [vmem:[#allocation5 + $0x10] ss:$8 sps:$4 sm:$0xff]   ;;  %v264_v15 = vld [vmem:[#allocation5 + $0x4] ss:$8 sps:$4 sm:$0xff]   ;;  %v266_v16 = vld [vmem:[#allocation5] ss:$8 sps:$4 sm:$0xff]  }
  0x20   :  { %154 = vmatpush1.bf16.msra.mxu0 %v248_v4  ;;  %v42_v17 = vld [vmem:[#allocation2] sm:$0xf]  ;;  %v62_v19 = vshrl.u32 %v61_v18, 7  ;;  %s209_s25 = sshll.u32 %s338_s24, 4  ;;  %s210_s25 = int_to_ptr.vmem [resolvable:$true] %s209_s25 }
  0x21   :  { %155 = vmatprep.subr.bf16.mxu0 %v249_v5  ;;  %v59_v21 = vld [vmem:[%s373_s2] sm:$0x3]  ;;  %s307_s26 = scalar_lea.vmem %s210_s25, 128  ;;  %p312_p11 = scmp.lt.s32.totalorder %s210_s25, %s210_s25 }
  0x22   :  { %v63_v20 = vsub.s32 0, %v62_v19  ;;  %v67_v22 = vsub.s32 1, %v62_v19  ;;  %p308_p10 = scmp.ne.s32.totalorder %s210_s25, %s307_s26  ;;  %p313_p12 = scmp.lt.s32.totalorder %s307_s26, %s307_s26 }
  0x24   :  { %156 = vmatpush1.bf16.msra.mxu0 %v251_v6  ;;  %v64_v23 = vrot.slane %v59_v21, %v63_v20  ;;  %v68_v24 = vrot.slane %v59_v21, %v67_v22  ;;  %p314_p13 = por %p313_p12, %p312_p11 }
  0x25   :  { %157 = vmatprep.subr.bf16.mxu0 %v252_v7 }
  0x26   :  { %p315_p0 = pnand %p314_p13, %p308_p10 }
  0x28   :  { %158 = vmatpush1.bf16.msra.mxu0 %v254_v8 }
  0x29   :  { %159 = vmatprep.subr.bf16.mxu0 %v255_v9 }
  0x2c   :  { %160 = vmatpush1.bf16.msra.mxu0 %v257_v10 }
  0x2d   :  { %161 = vmatprep.subr.bf16.mxu0 %v258_v11 }
  0x30   :  { %162 = vmatpush1.bf16.msra.mxu0 %v260_v12 }
  0x31   :  { %163 = vmatprep.subr.bf16.mxu0 %v261_v13 }
  0x34   :  { %164 = vmatpush1.bf16.msra.mxu0 %v263_v14 }
  0x35   :  { %165 = vmatprep.subr.bf16.mxu0 %v264_v15 }
  0x38   :  { %166 = vmatpush1.bf16.msra.mxu0 %v266_v16 }
  0x3b   :  { %184 = vmatmul.mubr.bf16.vlgmr.msra.gmra.mxu0 %v42_v17 }
  0xfb   :  { %v185_v25 = vpop.f32.mrf.mxu0 }
  0xfc   :  { %v186_v26 = vadd.f32 %v185_v25, %v64_v23 }
  0xfd   :  { %v187_v27 = vpop.f32.mrf.mxu0 }
  0xfe   :  { %v188_v28 = vadd.f32 %v187_v27, %v68_v24  ;;  %v192_v30 = vmax.f32 %v186_v26, 0.0 }
  0xff   :  { %v189_v29 = vpop.f32.mrf.mxu0 }
 0x100   :  { %v193_v31 = vmax.f32 %v188_v28, 0.0 }
 0x101   :  { %v190_v32 = vpop.f32.mrf.mxu0 }
 0x102   :  { %v236_v33 = vpack.c.bf16 %v193_v31, %v192_v30 }
 0x104   :  { %202 = vst [vmem:[#allocation7] sm:$0xff] %v236_v33 }
 0x105   :  { %318 = shalt.err (!%p315_p0)
}
 0x106   :  { %212 = dma.vmem_to_hbm [thread:$0]  %s210_s25, 128, %s374_s3, [#allocation4]  }
 0x107   :  { %331 = dma.done.wait [#allocation4], 128  }
 0x108   :  { %332 = vsyncadd [#allocation4], 4294967168 }
 0x109   :  { %216 = vsyncpa [#allocation3], 1 }
 0x10a   :  { %217 = vsyncpa [#allocation6], 1 }
 0x10b   :  { %218 = vsyncpa [#allocation4], 1 }

</bundles_post_ra>
